<compile_context>
chip_gen: v7x
topology: tpu7x:2x2x1
jax: 0.10.0
libtpu: 0.0.40
codegen_flags: <defaults>
</compile_context>

<pallas_src>
import functools
import math

import jax
import jax.numpy as jnp
from jax import lax
from jax.experimental import pallas as pl
from jax.experimental.pallas import tpu as pltpu

_F32 = jnp.float32


def _round_up(n, m):
    return ((n + m - 1) // m) * m


def _pad2(a, rows, cols):
    r, c = a.shape
    if (r, c) == (rows, cols):
        return a
    return jnp.pad(a, ((0, rows - r), (0, cols - c)))


def _pick_tile(dim_p, max_tile):
    """Largest multiple of 128 that divides dim_p (dim_p % 128 == 0) and <= max_tile."""
    max_tile = max(128, min(max_tile, dim_p))
    best, t = 128, 128
    while t <= max_tile:
        if dim_p % t == 0:
            best = t
        t += 128
    return best


def _vmem_limit_bytes(B_p, tk, t_out, w_itemsize, n_weight_streams):
    buf = 2  # double-buffered input streams
    wbytes = buf * n_weight_streams * tk * t_out * w_itemsize
    xbytes = buf * B_p * tk * 4
    rowbytes = buf * (8 * tk + 4 * 8 * t_out) * 4          # eps/bias row tiles (sublane-padded)
    outbytes = (buf + 1) * B_p * t_out * 4                  # output block + sigma scratch
    total = wbytes + xbytes + rowbytes + outbytes
    # Generous headroom for compiler-internal scratch; 48 MiB is safe on every
    # generation (v7x has the smallest VMEM: 64 MiB physical).
    return int(min(max(2 * total + (4 << 20), 16 << 20), 48 << 20))


# ----------------------------------------------------------------------------
# Kernels.  Grid = (n_out_tiles, n_k_tiles); k (the d_in reduction) innermost.
# The output block index is constant across k, so the f32 output block is
# VMEM-resident for the whole reduction and we accumulate into it directly.
# ----------------------------------------------------------------------------
def _noisy_linear_train_kernel(x_ref, wmu_ref, wsig_ref, eps_in_ref,
                               eps_out_ref, bmu_ref, bsig_ref,
                               o_ref, sig_acc_ref, *, compute_dtype, precision):
    k = pl.program_id(1)

    @pl.when(k == 0)
    def _init():
        o_ref[...] = jnp.zeros_like(o_ref)
        sig_acc_ref[...] = jnp.zeros_like(sig_acc_ref)

    x = x_ref[...]                       # (B_p, tk)   f32
    eps_in = eps_in_ref[...]             # (1, tk)     f32

    # mu path: x @ W_mu  (weights pre-transposed to (d_in, d_out)).
    o_ref[...] += lax.dot_general(
        x.astype(compute_dtype), wmu_ref[...].astype(compute_dtype),
        dimension_numbers=(((1,), (0,)), ((), ())),
        preferred_element_type=jnp.float32, precision=precision)

    # sigma path via the rank-1 identity — no (d_out, d_in) epsilon tile exists.
    # eps_out distributes over the k-sum, so it is applied once in finalize.
    sig_acc_ref[...] += lax.dot_general(
        (x * eps_in).astype(compute_dtype), wsig_ref[...].astype(compute_dtype),
        dimension_numbers=(((1,), (0,)), ((), ())),
        preferred_element_type=jnp.float32, precision=precision)

    @pl.when(k == pl.num_programs(1) - 1)
    def _finalize():
        eps_out = eps_out_ref[...]                        # (1, t_out)
        bias = bmu_ref[...] + bsig_ref[...] * eps_out     # bias_epsilon == eps_out
        o_ref[...] += sig_acc_ref[...] * eps_out + bias


def _mu_linear_eval_kernel(x_ref, wmu_ref, bmu_ref, o_ref, *, compute_dtype, precision):
    k = pl.program_id(1)

    @pl.when(k == 0)
    def _init():
        o_ref[...] = jnp.zeros_like(o_ref)

    o_ref[...] += lax.dot_general(
        x_ref[...].astype(compute_dtype), wmu_ref[...].astype(compute_dtype),
        dimension_numbers=(((1,), (0,)), ((), ())),
        preferred_element_type=jnp.float32, precision=precision)

    @pl.when(k == pl.num_programs(1) - 1)
    def _finalize():
        o_ref[...] += bmu_ref[...]


# ----------------------------------------------------------------------------
# One-time parameter preparation (hoisted layout plumbing).
# ----------------------------------------------------------------------------
def prepare_noisy_linear(weight_mu, weight_sigma, bias_mu, bias_sigma, *,
                         weight_dtype=jnp.bfloat16, eval_weight_dtype=None,
                         t_out_max=512, tk_max=1024):
    """Transpose weights to (d_in, d_out), pad to tile alignment and cast ONCE.

    Returns a dict to be stored alongside the module parameters and reused for
    every forward call (re-run only when the parameters themselves change).
    """
    d_out, d_in = weight_mu.shape
    d_in_p = _round_up(d_in, 128)
    d_out_p = _round_up(d_out, 128)

    tk = _pick_tile(d_in_p, tk_max)
    # Keep >=2 out-tiles when d_out allows so the "parallel" out-tile axis can
    # shard across v7x's two TensorCores.
    t_out_cap = t_out_max if d_out_p < 256 else min(t_out_max, d_out_p // 2)
    t_out = _pick_tile(d_out_p, t_out_cap)

    wmu_t = _pad2(weight_mu.astype(_F32).T, d_in_p, d_out_p)
    wsig_t = _pad2(weight_sigma.astype(_F32).T, d_in_p, d_out_p)

    wmu_store = wmu_t.astype(weight_dtype)
    if eval_weight_dtype is None or eval_weight_dtype == weight_dtype:
        wmu_eval = wmu_store
    else:
        # e.g. fp8 storage for the inference path on v7x; upcast happens in-kernel.
        wmu_eval = wmu_t.astype(eval_weight_dtype)

    return dict(
        d_in=d_in, d_out=d_out, d_in_p=d_in_p, d_out_p=d_out_p, tk=tk, t_out=t_out,
        weight_mu_t=wmu_store,
        weight_sigma_t=wsig_t.astype(weight_dtype),
        weight_mu_t_eval=wmu_eval,
        bias_mu=_pad2(bias_mu.astype(_F32).reshape(1, d_out), 1, d_out_p),
        bias_sigma=_pad2(bias_sigma.astype(_F32).reshape(1, d_out), 1, d_out_p),
    )


# ----------------------------------------------------------------------------
# Forward wrapper.
# ----------------------------------------------------------------------------
def noisy_linear(x, prepared, eps_in=None, eps_out=None, *,
                 training=True, precision=None):
    """Pallas implementation of NoisyLinear.forward using prepared parameters."""
    B, d_in = x.shape
    assert d_in == prepared["d_in"]
    d_out = prepared["d_out"]
    d_in_p, d_out_p = prepared["d_in_p"], prepared["d_out_p"]
    tk, t_out = prepared["tk"], prepared["t_out"]
    n_out, n_k = d_out_p // t_out, d_in_p // tk
    B_p = _round_up(B, 8)

    x_p = _pad2(x.astype(_F32), B_p, d_in_p)

    x_spec = pl.BlockSpec((B_p, tk), lambda j, k: (0, k))
    w_spec = pl.BlockSpec((tk, t_out), lambda j, k: (k, j))
    row_k_spec = pl.BlockSpec((1, tk), lambda j, k: (0, k))
    row_o_spec = pl.BlockSpec((1, t_out), lambda j, k: (0, j))
    o_spec = pl.BlockSpec((B_p, t_out), lambda j, k: (0, j))
    out_shape = jax.ShapeDtypeStruct((B_p, d_out_p), _F32)

    if training:
        assert eps_in is not None and eps_out is not None
        wmu, wsig = prepared["weight_mu_t"], prepared["weight_sigma_t"]
        compute_dtype = jnp.float32 if wmu.dtype == jnp.float32 else jnp.bfloat16
        eps_in_r = _pad2(eps_in.astype(_F32).reshape(1, d_in), 1, d_in_p)
        eps_out_r = _pad2(eps_out.astype(_F32).reshape(1, d_out), 1, d_out_p)
        operands = (x_p, wmu, wsig, eps_in_r, eps_out_r,
                    prepared["bias_mu"], prepared["bias_sigma"])
        in_specs = [x_spec, w_spec, w_spec, row_k_spec, row_o_spec,
                    row_o_spec, row_o_spec]
        scratch = [pltpu.VMEM((B_p, t_out), jnp.float32)]
        kernel = functools.partial(_noisy_linear_train_kernel,
                                   compute_dtype=compute_dtype, precision=precision)
        flops = 2 * 2 * B_p * d_in_p * d_out_p
        n_weight_streams = 2
    else:
        wmu = prepared["weight_mu_t_eval"]
        compute_dtype = jnp.float32 if wmu.dtype == jnp.float32 else jnp.bfloat16
        operands = (x_p, wmu, prepared["bias_mu"])
        in_specs = [x_spec, w_spec, row_o_spec]
        scratch = []
        kernel = functools.partial(_mu_linear_eval_kernel,
                                   compute_dtype=compute_dtype, precision=precision)
        flops = 2 * B_p * d_in_p * d_out_p
        n_weight_streams = 1

    nbytes = sum(int(a.size) * a.dtype.itemsize for a in operands) + B_p * d_out_p * 4
    cost = pl.CostEstimate(flops=flops, transcendentals=0, bytes_accessed=nbytes)
    cparams = pltpu.CompilerParams(
        dimension_semantics=("parallel", "arbitrary"),
        vmem_limit_bytes=_vmem_limit_bytes(B_p, tk, t_out,
                                           wmu.dtype.itemsize, n_weight_streams))

    y_p = pl.pallas_call(
        kernel,
        out_shape=out_shape,
        grid_spec=pltpu.PrefetchScalarGridSpec(
            num_scalar_prefetch=0,
            grid=(n_out, n_k),
            in_specs=in_specs,
            out_specs=o_spec,
            scratch_shapes=scratch),
        compiler_params=cparams,
        cost_estimate=cost,
    )(*operands)

    return y_p[:B, :d_out]


# ----------------------------------------------------------------------------
# Parameter / noise init (deterministic re-implementation of reset_parameters +
# reset_noise) and a pure-JAX reference of the PyTorch forward.
# ----------------------------------------------------------------------------
def _scale_noise(key, size):
    x = jax.random.normal(key, (size,), dtype=jnp.float32)
    return jnp.sign(x) * jnp.sqrt(jnp.abs(x))


def init_noisy_linear_params(key, input_dim, output_dim, std_init=0.4):
    k_wmu, k_bmu, k_ein, k_eout = jax.random.split(key, 4)
    mu_range = 1.0 / math.sqrt(input_dim)

    weight_mu = jax.random.uniform(
        k_wmu, (output_dim, input_dim), jnp.float32, -mu_range, mu_range)
    weight_sigma = jnp.full((output_dim, input_dim),
                            std_init / math.sqrt(input_dim), jnp.float32)
    bias_mu = jax.random.uniform(
        k_bmu, (output_dim,), jnp.float32, -mu_range, mu_range)
    bias_sigma = jnp.full((output_dim,),
                          std_init / math.sqrt(output_dim), jnp.float32)

    eps_in = _scale_noise(k_ein, input_dim)
    eps_out = _scale_noise(k_eout, output_dim)
    weight_epsilon = jnp.outer(eps_out, eps_in)      # epsilon_out.ger(epsilon_in)
    bias_epsilon = eps_out

    return dict(weight_mu=weight_mu, weight_sigma=weight_sigma,
                bias_mu=bias_mu, bias_sigma=bias_sigma,
                eps_in=eps_in, eps_out=eps_out,
                weight_epsilon=weight_epsilon, bias_epsilon=bias_epsilon)


def _reference(x, p, training=True):
    if training:
        w = p["weight_mu"] + p["weight_sigma"] * p["weight_epsilon"]
        b = p["bias_mu"] + p["bias_sigma"] * p["bias_epsilon"]
    else:
        w = p["weight_mu"]
        b = p["bias_mu"]
    return jnp.dot(x, w.T, precision=lax.Precision.HIGHEST) + b


if __name__ == "__main__":
    key = jax.random.PRNGKey(0)
    k_param, k_x = jax.random.split(key)

    batch, input_dim, output_dim = 2, 32, 64
    params = init_noisy_linear_params(k_param, input_dim, output_dim, std_init=0.4)
    x = jax.random.normal(k_x, (batch, input_dim), dtype=jnp.float32)

    ref_train = _reference(x, params, training=True)
    ref_eval = _reference(x, params, training=False)

    # ---- exact-parity path: f32 weight storage, HIGHEST MXU precision ----
    prep_f32 = prepare_noisy_linear(params["weight_mu"], params["weight_sigma"],
                                    params["bias_mu"], params["bias_sigma"],
                                    weight_dtype=jnp.float32)
    y_train = jax.block_until_ready(
        noisy_linear(x, prep_f32, params["eps_in"], params["eps_out"],
                     training=True, precision=lax.Precision.HIGHEST))
    y_eval = jax.block_until_ready(
        noisy_linear(x, prep_f32, training=False,
                     precision=lax.Precision.HIGHEST))

    # ---- default fast path: bf16 weight storage/feed, f32 accumulation ----
    prep_bf16 = prepare_noisy_linear(params["weight_mu"], params["weight_sigma"],
                                     params["bias_mu"], params["bias_sigma"])
    y_train_bf16 = jax.block_until_ready(
        noisy_linear(x, prep_bf16, params["eps_in"], params["eps_out"],
                     training=True))
    y_eval_bf16 = jax.block_until_ready(noisy_linear(x, prep_bf16, training=False))

    assert y_train.shape == (batch, output_dim) and y_train.dtype == jnp.float32
    assert jnp.allclose(y_train, ref_train, atol=2e-4, rtol=2e-4), \
        float(jnp.max(jnp.abs(y_train - ref_train)))
    assert jnp.allclose(y_eval, ref_eval, atol=2e-4, rtol=2e-4), \
        float(jnp.max(jnp.abs(y_eval - ref_eval)))
    assert jnp.allclose(y_train_bf16, ref_train, atol=5e-2, rtol=5e-2), \
        float(jnp.max(jnp.abs(y_train_bf16 - ref_train)))
    assert jnp.allclose(y_eval_bf16, ref_eval, atol=5e-2, rtol=5e-2), \
        float(jnp.max(jnp.abs(y_eval_bf16 - ref_eval)))

    print("KERNEL_OK")
</pallas_src>

<mosaic_0001>
module attributes {stable_mosaic.version = 11 : i64} {
  func.func @_noisy_linear_train_kernel(%arg0: i32, %arg1: i32, %arg2: memref<8x128xf32, #tpu.memory_space<vmem>>, %arg3: memref<128x128xf32, #tpu.memory_space<vmem>>, %arg4: memref<128x128xf32, #tpu.memory_space<vmem>>, %arg5: memref<1x128xf32, #tpu.memory_space<vmem>>, %arg6: memref<1x128xf32, #tpu.memory_space<vmem>>, %arg7: memref<1x128xf32, #tpu.memory_space<vmem>>, %arg8: memref<1x128xf32, #tpu.memory_space<vmem>>, %arg9: memref<8x128xf32, #tpu.memory_space<vmem>>, %arg10: memref<8x128xf32, #tpu.memory_space<vmem>>) attributes {dimension_semantics = [#tpu.dimension_semantics<parallel>, #tpu.dimension_semantics<arbitrary>], iteration_bounds = array<i64: 1, 1>, scalar_prefetch = 0 : i64, scratch_operands = 1 : i64, tpu.core_type = #tpu.core_type<tc>, window_params = [{transform_indices = @transform_0, window_bounds = array<i64: 8, 128>}, {transform_indices = @transform_1, window_bounds = array<i64: 128, 128>}, {transform_indices = @transform_2, window_bounds = array<i64: 128, 128>}, {transform_indices = @transform_3, window_bounds = array<i64: 1, 128>}, {transform_indices = @transform_4, window_bounds = array<i64: 1, 128>}, {transform_indices = @transform_5, window_bounds = array<i64: 1, 128>}, {transform_indices = @transform_6, window_bounds = array<i64: 1, 128>}, {transform_indices = @transform_7, window_bounds = array<i64: 8, 128>}]} {
    %c0_i32 = arith.constant 0 : i32
    %0 = arith.cmpi eq, %arg1, %c0_i32 : i32
    %1 = arith.extui %0 : i1 to i32
    %c0_i32_0 = arith.constant 0 : i32
    %2 = arith.cmpi ne, %1, %c0_i32_0 : i32
    scf.if %2 {
      %cst_19 = arith.constant 0.000000e+00 : f32
      %20 = vector.broadcast %cst_19 : f32 to vector<8x128xf32>
      %c0_20 = arith.constant 0 : index
      %c0_21 = arith.constant 0 : index
      %21 = vector.load %arg9[%c0_20, %c0_21] : memref<8x128xf32, #tpu.memory_space<vmem>>, vector<8x128xf32>
      tpu.vector_store %arg9[%c0_20, %c0_21], %20 {strides = array<i32>} : memref<8x128xf32, #tpu.memory_space<vmem>>, vector<8x128xf32>,
      %cst_22 = arith.constant 0.000000e+00 : f32
      %22 = vector.broadcast %cst_22 : f32 to vector<8x128xf32>
      %c0_23 = arith.constant 0 : index
      %c0_24 = arith.constant 0 : index
      %23 = vector.load %arg10[%c0_23, %c0_24] : memref<8x128xf32, #tpu.memory_space<vmem>>, vector<8x128xf32>
      tpu.vector_store %arg10[%c0_23, %c0_24], %22 {strides = array<i32>} : memref<8x128xf32, #tpu.memory_space<vmem>>, vector<8x128xf32>,
    } else {
    }
    %c0 = arith.constant 0 : index
    %c0_1 = arith.constant 0 : index
    %3 = vector.load %arg2[%c0, %c0_1] : memref<8x128xf32, #tpu.memory_space<vmem>>, vector<8x128xf32>
    %c0_2 = arith.constant 0 : index
    %c0_3 = arith.constant 0 : index
    %4 = vector.load %arg5[%c0_2, %c0_3] : memref<1x128xf32, #tpu.memory_space<vmem>>, vector<1x128xf32>
    %c0_4 = arith.constant 0 : index
    %c0_5 = arith.constant 0 : index
    %5 = vector.load %arg9[%c0_4, %c0_5] : memref<8x128xf32, #tpu.memory_space<vmem>>, vector<8x128xf32>
    %c0_6 = arith.constant 0 : index
    %c0_7 = arith.constant 0 : index
    %6 = vector.load %arg3[%c0_6, %c0_7] : memref<128x128xf32, #tpu.memory_space<vmem>>, vector<128x128xf32>
    %cst = arith.constant dense<0.000000e+00> : vector<8x128xf32>
    %7 = tpu.matmul %3, %6, %cst {dimension_numbers = #tpu.dot_dimension_numbers<[1], [0], [0], [1], [0, 0, 1, 1], [], []>, precision = #tpu.contract_precision<fp32>} : vector<8x128xf32>, vector<128x128xf32>, vector<8x128xf32> -> vector<8x128xf32>
    %8 = arith.addf %5, %7 : vector<8x128xf32>
    %c0_8 = arith.constant 0 : index
    %c0_9 = arith.constant 0 : index
    %9 = vector.load %arg9[%c0_8, %c0_9] : memref<8x128xf32, #tpu.memory_space<vmem>>, vector<8x128xf32>
    tpu.vector_store %arg9[%c0_8, %c0_9], %8 {strides = array<i32>} : memref<8x128xf32, #tpu.memory_space<vmem>>, vector<8x128xf32>,
    %c0_10 = arith.constant 0 : index
    %c0_11 = arith.constant 0 : index
    %10 = vector.load %arg10[%c0_10, %c0_11] : memref<8x128xf32, #tpu.memory_space<vmem>>, vector<8x128xf32>
    %11 = vector.broadcast %4 : vector<1x128xf32> to vector<8x128xf32>
    %12 = arith.mulf %3, %11 : vector<8x128xf32>
    %c0_12 = arith.constant 0 : index
    %c0_13 = arith.constant 0 : index
    %13 = vector.load %arg4[%c0_12, %c0_13] : memref<128x128xf32, #tpu.memory_space<vmem>>, vector<128x128xf32>
    %cst_14 = arith.constant dense<0.000000e+00> : vector<8x128xf32>
    %14 = tpu.matmul %12, %13, %cst_14 {dimension_numbers = #tpu.dot_dimension_numbers<[1], [0], [0], [1], [0, 0, 1, 1], [], []>, precision = #tpu.contract_precision<fp32>} : vector<8x128xf32>, vector<128x128xf32>, vector<8x128xf32> -> vector<8x128xf32>
    %15 = arith.addf %10, %14 : vector<8x128xf32>
    %c0_15 = arith.constant 0 : index
    %c0_16 = arith.constant 0 : index
    %16 = vector.load %arg10[%c0_15, %c0_16] : memref<8x128xf32, #tpu.memory_space<vmem>>, vector<8x128xf32>
    tpu.vector_store %arg10[%c0_15, %c0_16], %15 {strides = array<i32>} : memref<8x128xf32, #tpu.memory_space<vmem>>, vector<8x128xf32>,
    %c0_i32_17 = arith.constant 0 : i32
    %17 = arith.cmpi eq, %arg1, %c0_i32_17 : i32
    %18 = arith.extui %17 : i1 to i32
    %c0_i32_18 = arith.constant 0 : i32
    %19 = arith.cmpi ne, %18, %c0_i32_18 : i32
    scf.if %19 {
      %c0_19 = arith.constant 0 : index
      %c0_20 = arith.constant 0 : index
      %20 = vector.load %arg6[%c0_19, %c0_20] : memref<1x128xf32, #tpu.memory_space<vmem>>, vector<1x128xf32>
      %c0_21 = arith.constant 0 : index
      %c0_22 = arith.constant 0 : index
      %21 = vector.load %arg7[%c0_21, %c0_22] : memref<1x128xf32, #tpu.memory_space<vmem>>, vector<1x128xf32>
      %c0_23 = arith.constant 0 : index
      %c0_24 = arith.constant 0 : index
      %22 = vector.load %arg8[%c0_23, %c0_24] : memref<1x128xf32, #tpu.memory_space<vmem>>, vector<1x128xf32>
      %23 = arith.mulf %22, %20 : vector<1x128xf32>
      %24 = arith.addf %21, %23 : vector<1x128xf32>
      %c0_25 = arith.constant 0 : index
      %c0_26 = arith.constant 0 : index
      %25 = vector.load %arg9[%c0_25, %c0_26] : memref<8x128xf32, #tpu.memory_space<vmem>>, vector<8x128xf32>
      %c0_27 = arith.constant 0 : index
      %c0_28 = arith.constant 0 : index
      %26 = vector.load %arg10[%c0_27, %c0_28] : memref<8x128xf32, #tpu.memory_space<vmem>>, vector<8x128xf32>
      %27 = vector.broadcast %20 : vector<1x128xf32> to vector<8x128xf32>
      %28 = arith.mulf %26, %27 : vector<8x128xf32>
      %29 = vector.broadcast %24 : vector<1x128xf32> to vector<8x128xf32>
      %30 = arith.addf %28, %29 : vector<8x128xf32>
      %31 = arith.addf %25, %30 : vector<8x128xf32>
      %c0_29 = arith.constant 0 : index
      %c0_30 = arith.constant 0 : index
      %32 = vector.load %arg9[%c0_29, %c0_30] : memref<8x128xf32, #tpu.memory_space<vmem>>, vector<8x128xf32>
      tpu.vector_store %arg9[%c0_29, %c0_30], %31 {strides = array<i32>} : memref<8x128xf32, #tpu.memory_space<vmem>>, vector<8x128xf32>,
    } else {
    }
    return
  }
  func.func @transform_0(%arg0: i32, %arg1: i32) -> (i32, i32) {
    %c0_i32 = arith.constant 0 : i32
    %c0_i32_0 = arith.constant 0 : i32
    return %c0_i32, %arg1 : i32, i32
  }
  func.func @transform_1(%arg0: i32, %arg1: i32) -> (i32, i32) {
    %c0_i32 = arith.constant 0 : i32
    return %arg1, %arg0 : i32, i32
  }
  func.func @transform_2(%arg0: i32, %arg1: i32) -> (i32, i32) {
    %c0_i32 = arith.constant 0 : i32
    return %arg1, %arg0 : i32, i32
  }
  func.func @transform_3(%arg0: i32, %arg1: i32) -> (i32, i32) {
    %c0_i32 = arith.constant 0 : i32
    %c0_i32_0 = arith.constant 0 : i32
    return %c0_i32, %arg1 : i32, i32
  }
  func.func @transform_4(%arg0: i32, %arg1: i32) -> (i32, i32) {
    %c0_i32 = arith.constant 0 : i32
    %c0_i32_0 = arith.constant 0 : i32
    return %c0_i32, %arg0 : i32, i32
  }
  func.func @transform_5(%arg0: i32, %arg1: i32) -> (i32, i32) {
    %c0_i32 = arith.constant 0 : i32
    %c0_i32_0 = arith.constant 0 : i32
    return %c0_i32, %arg0 : i32, i32
  }
  func.func @transform_6(%arg0: i32, %arg1: i32) -> (i32, i32) {
    %c0_i32 = arith.constant 0 : i32
    %c0_i32_0 = arith.constant 0 : i32
    return %c0_i32, %arg0 : i32, i32
  }
  func.func @transform_7(%arg0: i32, %arg1: i32) -> (i32, i32) {
    %c0_i32 = arith.constant 0 : i32
    %c0_i32_0 = arith.constant 0 : i32
    return %c0_i32, %arg0 : i32, i32
  }
}

</mosaic_0001>

<bundles_post_ra>
// kernel: tpu_custom_call.1
= control target key start
LH: loop header
LB: loop body
LE: loop exit
PB: predicated region body
PF: predicated region fallthrough
CT: control target
= control target key end

     0   :  { %12 = vsyncpa [#allocation4], 0  ;;  %s3146_s0 = inlined_call_operand.hbm [shape: f32[8,128], index: 0, kind: input, shape index: {}]   ;;  %s3147_s1 = inlined_call_operand.hbm [shape: f32[128,128], index: 1, kind: input, shape index: {}]   ;;  %s3148_s2 = inlined_call_operand.hbm [shape: f32[128,128], index: 2, kind: input, shape index: {}]   ;;  %s3149_s3 = inlined_call_operand.vmem [shape: f32[1,128], index: 3, kind: input, shape index: {}]   ;;  %s3150_s4 = inlined_call_operand.vmem [shape: f32[1,128], index: 4, kind: input, shape index: {}]   ;;  %s3151_s5 = inlined_call_operand.vmem [shape: f32[1,128], index: 5, kind: input, shape index: {}]   ;;  %s3152_s6 = inlined_call_operand.vmem [shape: f32[1,128], index: 6, kind: input, shape index: {}]   ;;  %s3153_s7 = inlined_call_operand.hbm [shape: f32[8,128], index: 7, kind: output, shape index: {}]  }
   0x1   :  { %13 = vsyncpa [#allocation7], 0 }
   0x2   :  { %14 = vsyncpa [#allocation5], 0  ;;  %s2469_s24 = smov [#allocation6]   ;;  %s2375_s28 = scalar_lea.hbm %s3147_s1, 2048 }
   0x3   :  { %s30_s25 = sshll.u32 %s2469_s24, 4  ;;  %p2376_p0 = scmp.ne.s32.totalorder %s3147_s1, %s2375_s28  ;;  %s31_s25 = int_to_ptr.vmem [resolvable:$true] %s30_s25 }
   0x4   :  { %p2379_p1 = scmp.lt.u32.totalorder %s2375_s28, %s3147_s1 }
   0x6   :  { %p2381_p2 = pnand %p2379_p1, %p2376_p0 }
   0x8   :  { %2384 = shalt.err (!%p2381_p2)
}
   0x9   :  { %s2385_s10 = scalar_lea.vmem %s31_s25, 2048  ;;  %p2390_p4 = scmp.lt.s32.totalorder %s31_s25, %s31_s25 }
   0xa   :  { %p2386_p3 = scmp.ne.s32.totalorder %s31_s25, %s2385_s10  ;;  %p2391_p5 = scmp.lt.s32.totalorder %s2385_s10, %s2385_s10 }
   0xc   :  { %p2392_p6 = por %p2391_p5, %p2390_p4 }
   0xe   :  { %p2393_p7 = pnand %p2392_p6, %p2386_p3 }
  0x10   :  { %2396 = shalt.err (!%p2393_p7)
}
  0x11   :  { %s2470_s11 = smov 128   ;;  %s2471_s12 = smov 8  }
  0x12   :  { %36 = dma.hbm_to_vmem [thread:$0]  %s3147_s1, 2048, %s31_s25, [#allocation7], %s2470_s11, %s2470_s11, %s2471_s12  }
  0x13   :  { %s2472_s15 = smov [#allocation3]   ;;  %s2473_s17 = smov [#allocation8]  }
  0x14   :  { %s21_s16 = sshll.u32 %s2472_s15, 4  ;;  %s42_s18 = sshll.u32 %s2473_s17, 4  ;;  %s22_s16 = int_to_ptr.vmem [resolvable:$true] %s21_s16  ;;  %s43_s18 = int_to_ptr.vmem [resolvable:$true] %s42_s18 }
  0x15   :  { %s2397_s21 = scalar_lea.hbm %s3146_s0, 128 }
  0x16   :  { %p2398_p8 = scmp.ne.s32.totalorder %s3146_s0, %s2397_s21  ;;  %p2401_p9 = scmp.lt.u32.totalorder %s2397_s21, %s3146_s0 }
  0x18   :  { %p2403_p10 = pnand %p2401_p9, %p2398_p8 }
  0x1a   :  { %2406 = shalt.err (!%p2403_p10)
}
  0x1b   :  { %s2407_s1 = scalar_lea.vmem %s22_s16, 128  ;;  %p2412_p12 = scmp.lt.s32.totalorder %s22_s16, %s22_s16 }
  0x1c   :  { %p2408_p11 = scmp.ne.s32.totalorder %s22_s16, %s2407_s1  ;;  %p2413_p13 = scmp.lt.s32.totalorder %s2407_s1, %s2407_s1 }
  0x1e   :  { %p2414_p0 = por %p2413_p13, %p2412_p12 }
  0x20   :  { %p2415_p1 = pnand %p2414_p0, %p2408_p11 }
  0x22   :  { %2418 = shalt.err (!%p2415_p1)
}
  0x23   :  { %24 = dma.hbm_to_vmem [thread:$0]  %s3146_s0, 128, %s22_s16, [#allocation4]  }
  0x24   :  { %s2419_s30 = scalar_lea.hbm %s3148_s2, 2048 }
  0x25   :  { %p2420_p2 = scmp.ne.s32.totalorder %s3148_s2, %s2419_s30  ;;  %p2423_p3 = scmp.lt.u32.totalorder %s2419_s30, %s3148_s2 }
  0x27   :  { %p2425_p4 = pnand %p2423_p3, %p2420_p2 }
  0x29   :  { %2428 = shalt.err (!%p2425_p4)
}
  0x2a   :  { %s2429_s14 = scalar_lea.vmem %s43_s18, 2048  ;;  %p2434_p6 = scmp.lt.s32.totalorder %s43_s18, %s43_s18 }
  0x2b   :  { %p2430_p5 = scmp.ne.s32.totalorder %s43_s18, %s2429_s14  ;;  %p2435_p7 = scmp.lt.s32.totalorder %s2429_s14, %s2429_s14 }
  0x2d   :  { %p2436_p8 = por %p2435_p7, %p2434_p6 }
  0x2f   :  { %p2437_p9 = pnand %p2436_p8, %p2430_p5 }
  0x31   :  { %2440 = shalt.err (!%p2437_p9)
}
  0x32   :  { %48 = dma.hbm_to_vmem [thread:$0]  %s3148_s2, 2048, %s43_s18, [#allocation7], %s2470_s11, %s2470_s11, %s2471_s12  }
  0x33   :  { %2463 = dma.done.wait [#allocation4], 128  }
  0x34   :  { %2464 = vsyncadd [#allocation4], 4294967168 }
  0x35   :  { %2465 = dma.done.wait [#allocation7], 4096  }
  0x36   :  { %2466 = vsyncadd [#allocation7], 4294963200  ;;  %v3167_v0 = vmov 0.0|0.0   ;;  %vm2475_vm0 = vmmov 0   ;;  %v3154_v1 = vmov 0.0   ;;  %v75_v2 = vld [vmem:[#allocation6] sm:$0xff] }
  0x37   :  { %2068 = vmatprep.subr.bf16.mxu1 %v3167_v0  ;;  %2212 = vmatprep.subr.bf16.mxu0 %v3167_v0  ;;  %v76_v3 = vld [vmem:[#allocation6 + $0x8] sm:$0xff]  ;;  %v742_v4 = vld [vmem:[#allocation8] sm:$0xff]  ;;  %v92_v5 = vand.u32 4294901760, %v75_v2  ;;  %v77_v9 = vld [vmem:[#allocation6 + $0x10] sm:$0xff] }
  0x38   :  { %1680 = vmatprep.mubr.msk.f32.mxu1 %vm2475_vm0, %v3154_v1  ;;  %1890 = vmatprep.mubr.msk.f32.mxu0 %vm2475_vm0, %v3154_v1  ;;  %v95_v6 = vand.u32 4294901760, %v76_v3  ;;  %v743_v7 = vld [vmem:[#allocation8 + $0x8] sm:$0xff]  ;;  %v759_v8 = vand.u32 4294901760, %v742_v4  ;;  %v78_v10 = vld [vmem:[#allocation6 + $0x18] sm:$0xff]  ;;  %v98_v12 = vand.u32 4294901760, %v77_v9  ;;  %v744_v14 = vld [vmem:[#allocation8 + $0x10] sm:$0xff] }
  0x39   :  { %v762_v11 = vand.u32 4294901760, %v743_v7  ;;  %v101_v13 = vand.u32 4294901760, %v78_v10  ;;  %v745_v15 = vld [vmem:[#allocation8 + $0x18] sm:$0xff]  ;;  %v79_v16 = vld [vmem:[#allocation6 + $0x20] sm:$0xff]  ;;  %v80_v18 = vld [vmem:[#allocation6 + $0x28] sm:$0xff]  ;;  %v765_v23 = vand.u32 4294901760, %v744_v14  ;;  %v2575_v31 = vsub.f32 %v75_v2, %v92_v5 }
  0x3a   :  { %v2566_v17 = vpack.c.bf16 %v95_v6, %v92_v5  ;;  %v746_v19 = vld [vmem:[#allocation8 + $0x20] sm:$0xff]  ;;  %v747_v20 = vld [vmem:[#allocation8 + $0x28] sm:$0xff]  ;;  %v768_v24 = vand.u32 4294901760, %v745_v15  ;;  %v104_v25 = vand.u32 4294901760, %v79_v16  ;;  %v107_v26 = vand.u32 4294901760, %v80_v18  ;;  %v81_v29 = vld [vmem:[#allocation6 + $0x30] sm:$0xff] }
  0x3b   :  { %v2568_v21 = vpack.c.bf16 %v762_v11, %v759_v8  ;;  %v2571_v22 = vpack.c.bf16 %v101_v13, %v98_v12  ;;  %v771_v27 = vand.u32 4294901760, %v746_v19  ;;  %v774_v28 = vand.u32 4294901760, %v747_v20  ;;  %v82_v30 = vld [vmem:[#allocation6 + $0x38] sm:$0xff]  ;;  %v748_v34 = vld [vmem:[#allocation8 + $0x30] sm:$0xff]  ;;  %v83_v40 = vld [vmem:[#allocation6 + $0x40] sm:$0xff] }
  0x3c   :  { %3213 = vst [vmem:[#allocation13_spill] sm:$0xff] %v2566_v17  ;;  %2070 = vmatpush3.bf16.msra.mxu1 %v2566_v17  ;;  %v2577_v32 = vsub.f32 %v76_v3, %v95_v6  ;;  %v2580_v33 = vpack.c.bf16 %v768_v24, %v765_v23  ;;  %v749_v35 = vld [vmem:[#allocation8 + $0x38] sm:$0xff]  ;;  %v2582_v36 = vsub.f32 %v742_v4, %v759_v8  ;;  %v110_v43 = vand.u32 4294901760, %v81_v29  ;;  %v84_v45 = vld [vmem:[#allocation6 + $0x48] sm:$0xff]  ;;  %v750_v46 = vld [vmem:[#allocation8 + $0x40] sm:$0xff] }
  0x3d   :  { %3214 = vst [vmem:[#allocation14_spill] sm:$0xff] %v2568_v21  ;;  %3215 = vst [vmem:[#allocation15_spill] sm:$0xff] %v2571_v22  ;;  %2214 = vmatpush3.bf16.msra.mxu0 %v2568_v21  ;;  %2071 = vmatprep.subr.bf16.mxu1 %v3167_v0  ;;  %v2584_v37 = vsub.f32 %v743_v7, %v762_v11  ;;  %v2586_v38 = vsub.f32 %v77_v9, %v98_v12  ;;  %v113_v44 = vand.u32 4294901760, %v82_v30  ;;  %v751_v47 = vld [vmem:[#allocation8 + $0x48] sm:$0xff]  ;;  %v85_v52 = vld [vmem:[#allocation6 + $0x50] sm:$0xff] }
  0x3e   :  { %2215 = vmatprep.subr.bf16.mxu0 %v3167_v0  ;;  %3216 = vst [vmem:[#allocation16_spill] sm:$0xff] %v2580_v33  ;;  %v2588_v39 = vsub.f32 %v78_v10, %v101_v13  ;;  %v2591_v41 = vsub.f32 %v744_v14, %v765_v23  ;;  %v2593_v42 = vpack.c.bf16 %v107_v26, %v104_v25  ;;  %v777_v50 = vand.u32 4294901760, %v748_v34  ;;  %v86_v57 = vld [vmem:[#allocation6 + $0x58] sm:$0xff]  ;;  %v752_v58 = vld [vmem:[#allocation8 + $0x50] sm:$0xff]  ;;  %v87_v2 = vld [vmem:[#allocation6 + $0x60] sm:$0xff] }
  0x3f   :  { %v2596_v48 = vsub.f32 %v745_v15, %v768_v24  ;;  %v2599_v49 = vpack.c.bf16 %v774_v28, %v771_v27  ;;  %v780_v51 = vand.u32 4294901760, %v749_v35  ;;  %v2602_v53 = vsub.f32 %v79_v16, %v104_v25  ;;  %v753_v59 = vld [vmem:[#allocation8 + $0x58] sm:$0xff]  ;;  %v88_v3 = vld [vmem:[#allocation6 + $0x68] sm:$0xff]  ;;  %v754_v12 = vld [vmem:[#allocation8 + $0x60] sm:$0xff] }
  0x40   :  { %2073 = vmatpush3.bf16.msra.mxu1 %v2571_v22  ;;  %3217 = vst [vmem:[#allocation17_spill] sm:$0xff] %v2593_v42  ;;  %v2604_v54 = vsub.f32 %v80_v18, %v107_v26  ;;  %v2606_v55 = vsub.f32 %v746_v19, %v771_v27  ;;  %v2608_v56 = vsub.f32 %v747_v20, %v774_v28  ;;  %v116_v60 = vand.u32 4294901760, %v83_v40  ;;  %v755_v13 = vld [vmem:[#allocation8 + $0x68] sm:$0xff] }
  0x41   :  { %2217 = vmatpush3.bf16.msra.mxu0 %v2580_v33  ;;  %2074 = vmatprep.subr.bf16.mxu1 %v3167_v0  ;;  %3218 = vst [vmem:[#allocation18_spill] sm:$0xff] %v2599_v49  ;;  %v119_v61 = vand.u32 4294901760, %v84_v45  ;;  %v783_v62 = vand.u32 4294901760, %v750_v46  ;;  %v786_v63 = vand.u32 4294901760, %v751_v47  ;;  %v2611_v4 = vpack.c.bf16 %v113_v44, %v110_v43 }
  0x42   :  { %2218 = vmatprep.subr.bf16.mxu0 %v3167_v0  ;;  %v2613_v5 = vsub.f32 %v81_v29, %v110_v43  ;;  %v2615_v6 = vsub.f32 %v82_v30, %v113_v44  ;;  %v2617_v7 = vsub.f32 %v748_v34, %v777_v50  ;;  %v2621_v8 = vpack.c.bf16 %v780_v51, %v777_v50  ;;  %v72_v29 = vld [vmem:[#allocation3] sm:$0xff] }
  0x43   :  { %3219 = vst [vmem:[#allocation19_spill] sm:$0xff] %v2611_v4  ;;  %v2623_v9 = vsub.f32 %v749_v35, %v780_v51  ;;  %v122_v10 = vand.u32 4294901760, %v85_v52  ;;  %v125_v11 = vand.u32 4294901760, %v86_v57  ;;  %v789_v14 = vand.u32 4294901760, %v752_v58 }
  0x44   :  { %2076 = vmatpush3.bf16.msra.mxu1 %v2593_v42  ;;  %3220 = vst [vmem:[#allocation20_spill] sm:$0xff] %v2621_v8  ;;  %v792_v15 = vand.u32 4294901760, %v753_v59  ;;  %v128_v16 = vand.u32 4294901760, %v87_v2  ;;  %v131_v18 = vand.u32 4294901760, %v88_v3  ;;  %v2626_v19 = vpack.c.bf16 %v119_v61, %v116_v60 }
  0x45   :  { %2220 = vmatpush3.bf16.msra.mxu0 %v2599_v49  ;;  %2077 = vmatprep.subr.bf16.mxu1 %v3167_v0  ;;  %v2628_v20 = vsub.f32 %v83_v40, %v116_v60  ;;  %v2630_v23 = vsub.f32 %v84_v45, %v119_v61  ;;  %v2632_v24 = vpack.c.bf16 %v786_v63, %v783_v62  ;;  %v795_v27 = vand.u32 4294901760, %v754_v12  ;;  %v89_v40 = vld [vmem:[#allocation6 + $0x70] sm:$0xff]  ;;  %v1443_v60 = vld [vmem:[%s3149_s3] ss:$0 sm:$0xff] }
  0x46   :  { %2221 = vmatprep.subr.bf16.mxu0 %v3167_v0  ;;  %3221 = vst [vmem:[#allocation21_spill] sm:$0xff] %v2626_v19  ;;  %v2635_v25 = vsub.f32 %v750_v46, %v783_v62  ;;  %v2637_v26 = vsub.f32 %v751_v47, %v786_v63  ;;  %v798_v28 = vand.u32 4294901760, %v755_v13  ;;  %v2641_v30 = vpack.c.bf16 %v125_v11, %v122_v10  ;;  %v90_v47 = vld [vmem:[#allocation6 + $0x78] sm:$0xff] }
  0x47   :  { %3222 = vst [vmem:[#allocation22_spill] sm:$0xff] %v2632_v24  ;;  %v2643_v34 = vsub.f32 %v85_v52, %v122_v10  ;;  %v2645_v35 = vsub.f32 %v86_v57, %v125_v11  ;;  %v2648_v43 = vpack.c.bf16 %v792_v15, %v789_v14  ;;  %v2650_v44 = vsub.f32 %v752_v58, %v789_v14  ;;  %v2676_v10 = vld [vmem:[#allocation8 + $0x70] sm:$0xff]  ;;  %v2678_v11 = vld [vmem:[#allocation8 + $0x78] sm:$0xff] }
  0x48   :  { %2079 = vmatpush3.bf16.msra.mxu1 %v2611_v4  ;;  %3223 = vst [vmem:[#allocation23_spill] sm:$0xff] %v2641_v30  ;;  %v2652_v45 = vsub.f32 %v753_v59, %v792_v15  ;;  %v2654_v46 = vpack.c.bf16 %v131_v18, %v128_v16  ;;  %v2656_v50 = vsub.f32 %v87_v2, %v128_v16  ;;  %v2658_v51 = vand.u32 4294901760, %v72_v29 }
  0x49   :  { %2223 = vmatpush3.bf16.msra.mxu0 %v2621_v8  ;;  %2080 = vmatprep.subr.bf16.mxu1 %v3167_v0  ;;  %3224 = vst [vmem:[#allocation24_spill] sm:$0xff] %v2648_v43  ;;  %v3156_v52 = vand.u32 4294901760, %v2575_v31  ;;  %v3157_v57 = vand.u32 4294901760, %v2577_v32  ;;  %v2666_v58 = vsub.f32 %v88_v3, %v131_v18  ;;  %v2668_v59 = vpack.c.bf16 %v798_v28, %v795_v27 }
  0x4a   :  { %2224 = vmatprep.subr.bf16.mxu0 %v3167_v0  ;;  %3225 = vst [vmem:[#allocation25_spill] sm:$0xff] %v2654_v46  ;;  %v2670_v61 = vsub.f32 %v754_v12, %v795_v27  ;;  %v134_v62 = vand.u32 4294901760, %v89_v40  ;;  %v2674_v63 = vsub.f32 %v755_v13, %v798_v28  ;;  %v137_v2 = vand.u32 4294901760, %v90_v47 }
  0x4b   :  { %3226 = vst [vmem:[#allocation26_spill] sm:$0xff] %v2668_v59  ;;  %v2681_v14 = vsub.f32 %v72_v29, %v2658_v51  ;;  %v3158_v3 = vand.u32 4294901760, %v2582_v36  ;;  %v186_v12 = vsub.f32 %v2575_v31, %v3156_v52  ;;  %v741_v15 = vmul.f32 %v1443_v60, %v72_v29 }
  0x4c   :  { %2082 = vmatpush3.bf16.msra.mxu1 %v2626_v19  ;;  %3227 = vst [vmem:[#allocation27_spill] sm:$0xff] %v2674_v63  ;;  %v3161_v13 = vand.u32 4294901760, %v2584_v37  ;;  %v193_v27 = vsub.f32 %v2577_v32, %v3157_v57  ;;  %v2708_v57 = vpack.c.bf16 %v137_v2, %v134_v62  ;;  %v2712_v1 = vsub.f32 %v90_v47, %v137_v2 }
  0x4d   :  { %2226 = vmatpush3.bf16.msra.mxu0 %v2632_v24  ;;  %2083 = vmatprep.subr.bf16.mxu1 %v3167_v0  ;;  %3228 = vst [vmem:[#allocation28_spill] sm:$0xff] %v2681_v14  ;;  %v3166_v18 = vand.u32 4294901760, %v2681_v14  ;;  %v853_v28 = vsub.f32 %v2582_v36, %v3158_v3  ;;  %v2701_v52 = vand.u32 4294901760, %v741_v15  ;;  %v2710_v3 = vsub.f32 %v89_v40, %v134_v62 }
  0x4e   :  { %2227 = vmatprep.subr.bf16.mxu0 %v3167_v0  ;;  %v860_v16 = vsub.f32 %v2584_v37, %v3161_v13  ;;  %3229 = vst [vmem:[#allocation29_spill] sm:$0xff] %v2708_v57  ;;  %v194_v40 = vand.u32 4294901760, %v193_v27  ;;  %v3232_v47 = vand.u32 4294901760, %v2588_v39  ;;  %v3234_v27 = vand.u32 4294901760, %v2676_v10 }
  0x4f   :  { %v175_v60 = vsub.f32 %v2681_v14, %v3166_v18  ;;  %v2720_v13 = vsub.f32 %v741_v15, %v2701_v52  ;;  %v854_v62 = vand.u32 4294901760, %v853_v28  ;;  %v3235_v28 = vand.u32 4294901760, %v2678_v11 }
  0x50   :  { %2085 = vmatpush3.bf16.msra.mxu1 %v2641_v30  ;;  %v187_v30 = vand.u32 4294901760, %v186_v12  ;;  %v207_v2 = vsub.f32 %v2588_v39, %v3232_v47  ;;  %v861_v12 = vand.u32 4294901760, %v860_v16  ;;  %v3237_v29 = vand.u32 4294901760, %v2591_v41 }
  0x51   :  { %2229 = vmatpush3.bf16.msra.mxu0 %v2648_v43  ;;  %2086 = vmatprep.subr.bf16.mxu1 %v3167_v0  ;;  %3230 = vst [vmem:[#allocation30_spill] sm:$0xff] %v2720_v13  ;;  %v3231_v43 = vand.u32 4294901760, %v2586_v38  ;;  %v2739_v47 = vpack.c.bf16 %v3235_v28, %v3234_v27  ;;  %v3238_v16 = vand.u32 4294901760, %v2596_v48  ;;  %v176_v18 = vand.u32 4294901760, %v175_v60 }
  0x52   :  { %2230 = vmatprep.subr.bf16.mxu0 %v3167_v0  ;;  %v3185_v27 = vand.u32 4294901760, %v2608_v56  ;;  %v208_v28 = vand.u32 4294901760, %v207_v2  ;;  %v3240_v4 = vand.u32 4294901760, %v2602_v53  ;;  %v2093_v0 = vpack.c.bf16 %v194_v40, %v187_v30 }
  0x53   :  { %v200_v24 = vsub.f32 %v2586_v38, %v3231_v43  ;;  %v3233_v43 = vmov 0.0|0.0   ;;  %3236 = vst [vmem:[#allocation31_spill] sm:$0xff] %v2739_v47  ;;  %v874_v15 = vsub.f32 %v2596_v48, %v3238_v16  ;;  %v3188_v16 = vand.u32 4294901760, %v2615_v6 }
  0x54   :  { %2088 = vmatpush3.bf16.msra.mxu1 %v2654_v46  ;;  %v867_v46 = vsub.f32 %v2591_v41, %v3237_v29  ;;  %v214_v29 = vsub.f32 %v2602_v53, %v3240_v4  ;;  %v2237_v42 = vpack.c.bf16 %v861_v12, %v854_v62  ;;  %v3241_v33 = vand.u32 4294901760, %v2604_v54 }
  0x55   :  { %2232 = vmatpush3.bf16.msra.mxu0 %v2668_v59  ;;  %2089 = vmatprep.subr.bf16.mxu1 %v3233_v43  ;;  %v3239_v59 = vand.u32 4294901760, %v2720_v13  ;;  %v201_v8 = vand.u32 4294901760, %v200_v24  ;;  %v875_v2 = vand.u32 4294901760, %v874_v15  ;;  %v3242_v4 = vand.u32 4294901760, %v2606_v55 }
  0x56   :  { %2233 = vmatprep.subr.bf16.mxu0 %v3233_v43  ;;  %v221_v24 = vsub.f32 %v2604_v54, %v3241_v33  ;;  %v888_v30 = vsub.f32 %v2608_v56, %v3185_v27  ;;  %v235_v40 = vsub.f32 %v2615_v6, %v3188_v16  ;;  %v3192_v62 = vand.u32 4294901760, %v2623_v9 }
  0x57   :  { %v842_v19 = vsub.f32 %v2720_v13, %v3239_v59  ;;  %v868_v59 = vand.u32 4294901760, %v867_v46  ;;  %v881_v49 = vsub.f32 %v2606_v55, %v3242_v4  ;;  %v3191_v46 = vand.u32 4294901760, %v2617_v7 }
  0x58   :  { %2091 = vmatpush3.bf16.msra.mxu1 %v2708_v57  ;;  %v2096_v12 = vpack.c.bf16 %v208_v28, %v201_v8  ;;  %v215_v15 = vand.u32 4294901760, %v214_v29  ;;  %v3196_v4 = vand.u32 4294901760, %v2628_v20  ;;  %v3195_v27 = vand.u32 4294901760, %v2630_v23 }
  0x59   :  { %v843_v60 = vand.u32 4294901760, %v842_v19  ;;  %2235 = vmatpush3.bf16.msra.mxu0 %v2739_v47  ;;  %2092 = vmatprep.subr.bf16.mxu1 %v3233_v43  ;;  %v3243_v19 = vand.u32 4294901760, %v2613_v5  ;;  %v222_v47 = vand.u32 4294901760, %v221_v24  ;;  %v902_v16 = vsub.f32 %v2623_v9, %v3192_v62 }
  0x5a   :  { %2236 = vmatprep.subr.bf16.mxu0 %v3233_v43  ;;  %v3193_v57 = vand.u32 4294901760, %v2635_v25  ;;  %v2240_v8 = vpack.c.bf16 %v875_v2, %v868_v59  ;;  %v889_v28 = vand.u32 4294901760, %v888_v30  ;;  %v3244_v29 = vand.u32 4294901760, %v2676_v10 }
  0x5b   :  { %v228_v33 = vsub.f32 %v2613_v5, %v3243_v19  ;;  %1681 = vmatmul.mubr.f32.vlgmr.msra.gmra.mrb[0].mxu1 %v176_v18  ;;  %v895_v19 = vsub.f32 %v2617_v7, %v3191_v46  ;;  %v882_v18 = vand.u32 4294901760, %v881_v49  ;;  %v236_v46 = vand.u32 4294901760, %v235_v40 }
  0x5c   :  { %2094 = vmatpush3.bf16.msra.mxu1 %v2093_v0  ;;  %1891 = vmatmul.mubr.f32.vlgmr.msra.gmra.mrb[0].mxu0 %v843_v60  ;;  %v3194_v0 = vand.u32 4294901760, %v2637_v26  ;;  %v2793_v60 = vsub.f32 %v2676_v10, %v3244_v29  ;;  %v3245_v62 = vmov 0.0   ;;  %v903_v59 = vand.u32 4294901760, %v902_v16 }
  0x5d   :  { %2238 = vmatpush3.bf16.msra.mxu0 %v2237_v42  ;;  %2095 = vmatprep.subr.bf16.mxu1 %v3233_v43  ;;  %v229_v24 = vand.u32 4294901760, %v228_v33  ;;  %v242_v42 = vsub.f32 %v2628_v20, %v3196_v4  ;;  %v896_v49 = vand.u32 4294901760, %v895_v19  ;;  %v249_v2 = vsub.f32 %v2630_v23, %v3195_v27 }
  0x5e   :  { %2239 = vmatprep.subr.bf16.mxu0 %v3233_v43  ;;  %1715 = vmatprep.mubr.msk.f32.mxu1 %vm2475_vm0, %v3245_v62  ;;  %v909_v10 = vsub.f32 %v2635_v25, %v3193_v57  ;;  %v2099_v30 = vpack.c.bf16 %v222_v47, %v215_v15  ;;  %v916_v33 = vsub.f32 %v2637_v26, %v3194_v0  ;;  %v3246_v19 = vand.u32 4294901760, %v2678_v11 }
  0x5f   :  { %1925 = vmatprep.mubr.msk.f32.mxu0 %vm2475_vm0, %v3245_v62  ;;  %v2243_v57 = vpack.c.bf16 %v889_v28, %v882_v18  ;;  %v2102_v15 = vpack.c.bf16 %v236_v46, %v229_v24  ;;  %v243_v0 = vand.u32 4294901760, %v242_v42  ;;  %v3197_v27 = vand.u32 4294901760, %v2656_v50 }
  0x60   :  { %2097 = vmatpush3.bf16.msra.mxu1 %v2096_v12  ;;  %v2817_v29 = vsub.f32 %v2678_v11, %v3246_v19  ;;  %v3198_v12 = vand.u32 4294901760, %v2650_v44  ;;  %v3201_v4 = vand.u32 4294901760, %v2666_v58  ;;  %v2246_v16 = vpack.c.bf16 %v903_v59, %v896_v49 }
  0x61   :  { %2241 = vmatpush3.bf16.msra.mxu0 %v2240_v8  ;;  %2098 = vmatprep.subr.bf16.mxu1 %v3233_v43  ;;  %v250_v40 = vand.u32 4294901760, %v249_v2  ;;  %v910_v11 = vand.u32 4294901760, %v909_v10  ;;  %v3206_v8 = vand.u32 4294901760, %v2670_v61  ;;  %v917_v19 = vand.u32 4294901760, %v916_v33 }
  0x62   :  { %2242 = vmatprep.subr.bf16.mxu0 %v3233_v43  ;;  %v3247_v18 = vand.u32 4294901760, %v2643_v34  ;;  %v3248_v47 = vand.u32 4294901760, %v2645_v35  ;;  %v943_v24 = vand.u32 4294901760, %v2674_v63  ;;  %v923_v42 = vsub.f32 %v2650_v44, %v3198_v12 }
  0x63   :  { %v3249_v49 = vand.u32 4294901760, %v2652_v45  ;;  %v270_v2 = vsub.f32 %v2656_v50, %v3197_v27  ;;  %v937_v10 = vsub.f32 %v2670_v61, %v3206_v8  ;;  %v283_v33 = vand.u32 4294901760, %v2710_v3 }
  0x64   :  { %2100 = vmatpush3.bf16.msra.mxu1 %v2099_v30  ;;  %v256_v28 = vsub.f32 %v2643_v34, %v3247_v18  ;;  %v263_v46 = vsub.f32 %v2645_v35, %v3248_v47  ;;  %v944_v30 = vsub.f32 %v2674_v63, %v943_v24  ;;  %v290_v47 = vand.u32 4294901760, %v2712_v1 }
  0x65   :  { %2244 = vmatpush3.bf16.msra.mxu0 %v2243_v57  ;;  %2101 = vmatprep.subr.bf16.mxu1 %v3233_v43  ;;  %v930_v59 = vsub.f32 %v2652_v45, %v3249_v49  ;;  %v277_v57 = vsub.f32 %v2666_v58, %v3201_v4  ;;  %v950_v18 = vand.u32 4294901760, %v2793_v60  ;;  %v2105_v49 = vpack.c.bf16 %v250_v40, %v243_v0 }
  0x66   :  { %2245 = vmatprep.subr.bf16.mxu0 %v3233_v43  ;;  %v2249_v27 = vpack.c.bf16 %v917_v19, %v910_v11  ;;  %v257_v12 = vand.u32 4294901760, %v256_v28  ;;  %v264_v22 = vand.u32 4294901760, %v263_v46  ;;  %v924_v4 = vand.u32 4294901760, %v923_v42 }
  0x67   :  { %v931_v21 = vand.u32 4294901760, %v930_v59  ;;  %v271_v13 = vand.u32 4294901760, %v270_v2  ;;  %v957_v8 = vand.u32 4294901760, %v2817_v29  ;;  %v278_v17 = vand.u32 4294901760, %v277_v57 }
  0x68   :  { %2103 = vmatpush3.bf16.msra.mxu1 %v2102_v15  ;;  %v938_v14 = vand.u32 4294901760, %v937_v10  ;;  %v945_v63 = vand.u32 4294901760, %v944_v30  ;;  %v284_v62 = vsub.f32 %v2710_v3, %v283_v33  ;;  %v291_v0 = vsub.f32 %v2712_v1, %v290_v47 }
  0x69   :  { %2247 = vmatpush3.bf16.msra.mxu0 %v2246_v16  ;;  %2104 = vmatprep.subr.bf16.mxu1 %v3233_v43  ;;  %v951_v40 = vsub.f32 %v2793_v60, %v950_v18  ;;  %v2108_v16 = vpack.c.bf16 %v264_v22, %v257_v12  ;;  %v2252_v15 = vpack.c.bf16 %v931_v21, %v924_v4  ;;  %v3250_v2 = vand.u32 4294901760, %v2575_v31 }
  0x6a   :  { %2248 = vmatprep.subr.bf16.mxu0 %v3233_v43  ;;  %v958_v11 = vsub.f32 %v2817_v29, %v957_v8  ;;  %v2111_v19 = vpack.c.bf16 %v278_v17, %v271_v13  ;;  %v2255_v28 = vpack.c.bf16 %v945_v63, %v938_v14  ;;  %v285_v46 = vand.u32 4294901760, %v284_v62 }
  0x6b   :  { %v292_v42 = vand.u32 4294901760, %v291_v0  ;;  %v952_v59 = vand.u32 4294901760, %v951_v40  ;;  %v3251_v57 = vand.u32 4294901760, %v2577_v32  ;;  %v3252_v22 = vand.u32 4294901760, %v2582_v36 }
  0x6c   :  { %2106 = vmatpush3.bf16.msra.mxu1 %v2105_v49  ;;  %v3254_v4 = vand.u32 4294901760, %v2586_v38  ;;  %v3255_v17 = vand.u32 4294901760, %v2588_v39  ;;  %v3256_v14 = vand.u32 4294901760, %v2591_v41  ;;  %v3257_v13 = vand.u32 4294901760, %v2596_v48 }
  0x6d   :  { %2250 = vmatpush3.bf16.msra.mxu0 %v2249_v27  ;;  %2107 = vmatprep.subr.bf16.mxu1 %v3233_v43  ;;  %v2867_v10 = vpack.c.bf16 %v3251_v57, %v3250_v2  ;;  %v3253_v27 = vand.u32 4294901760, %v2584_v37  ;;  %v3258_v12 = vand.u32 4294901760, %v2602_v53  ;;  %v3259_v30 = vand.u32 4294901760, %v2604_v54 }
  0x6e   :  { %2251 = vmatprep.subr.bf16.mxu0 %v3233_v43  ;;  %v2879_v63 = vpack.c.bf16 %v3255_v17, %v3254_v4  ;;  %v2885_v62 = vpack.c.bf16 %v3257_v13, %v3256_v14  ;;  %v3260_v0 = vand.u32 4294901760, %v2606_v55  ;;  %v3261_v40 = vand.u32 4294901760, %v2608_v56 }
  0x6f   :  { %v2873_v21 = vpack.c.bf16 %v3253_v27, %v3252_v22  ;;  %v2891_v49 = vpack.c.bf16 %v3259_v30, %v3258_v12  ;;  %v959_v2 = vand.u32 4294901760, %v958_v11  ;;  %v3262_v57 = vand.u32 4294901760, %v2613_v5 }
  0x70   :  { %2109 = vmatpush3.bf16.msra.mxu1 %v2108_v16  ;;  %v2897_v16 = vpack.c.bf16 %v3261_v40, %v3260_v0  ;;  %v3263_v22 = vand.u32 4294901760, %v2615_v6  ;;  %v3264_v4 = vand.u32 4294901760, %v2617_v7  ;;  %v3265_v17 = vand.u32 4294901760, %v2623_v9 }
  0x71   :  { %2253 = vmatpush3.bf16.msra.mxu0 %v2252_v15  ;;  %2110 = vmatprep.subr.bf16.mxu1 %v3233_v43  ;;  %v3267_v13 = vand.u32 4294901760, %v2628_v20  ;;  %v3268_v12 = vand.u32 4294901760, %v2630_v23  ;;  %v3270_v11 = vand.u32 4294901760, %v2635_v25  ;;  %v3271_v30 = vand.u32 4294901760, %v2637_v26 }
  0x72   :  { %v2904_v27 = vpack.c.bf16 %v3263_v22, %v3262_v57  ;;  %v2910_v14 = vpack.c.bf16 %v3265_v17, %v3264_v4  ;;  %2254 = vmatprep.subr.bf16.mxu0 %v3233_v43  ;;  %v3273_v40 = vand.u32 4294901760, %v2643_v34  ;;  %v3274_v57 = vand.u32 4294901760, %v2645_v35 }
  0x73   :  { %v2916_v15 = vpack.c.bf16 %v3268_v12, %v3267_v13  ;;  %v2923_v0 = vpack.c.bf16 %v3271_v30, %v3270_v11  ;;  %v3275_v4 = vand.u32 4294901760, %v2650_v44  ;;  %v3276_v17 = vand.u32 4294901760, %v2652_v45 }
  0x74   :  { %3266 = vst [vmem:[#allocation32_spill] sm:$0xff] %v2910_v14  ;;  %v2929_v22 = vpack.c.bf16 %v3274_v57, %v3273_v40  ;;  %v3277_v12 = vand.u32 4294901760, %v2656_v50  ;;  %v3279_v11 = vand.u32 4294901760, %v2670_v61  ;;  %v2949_v40 = vpack.c.bf16 %v957_v8, %v950_v18  ;;  %2112 = vmatpush3.bf16.msra.mxu1 %v2111_v19 }
  0x75   :  { %3269 = vst [vmem:[#allocation33_spill] sm:$0xff] %v2916_v15  ;;  %3272 = vst [vmem:[#allocation34_spill] sm:$0xff] %v2923_v0  ;;  %v2935_v13 = vpack.c.bf16 %v3276_v17, %v3275_v4  ;;  %v3278_v15 = vand.u32 4294901760, %v2666_v58  ;;  %v2947_v0 = vpack.c.bf16 %v290_v47, %v283_v33  ;;  %v2114_v57 = vpack.c.bf16 %v292_v42, %v285_v46  ;;  %v3298_v33 = vld [vmem:[#allocation29_spill] sm:$0xff]  ;;  %v3299_v47 = vld [vmem:[#allocation31_spill] sm:$0xff] }
  0x76   :  { %v2945_v30 = vpack.c.bf16 %v943_v24, %v3279_v11  ;;  %2256 = vmatpush3.bf16.msra.mxu0 %v2255_v28  ;;  %2113 = vmatprep.subr.bf16.mxu1 %v3233_v43  ;;  %v2258_v4 = vpack.c.bf16 %v959_v2, %v952_v59  ;;  %v2261_v24 = vpack.c.bf16 %v2584_v37, %v2582_v36 }
  0x77   :  { %v2941_v14 = vpack.c.bf16 %v3278_v15, %v3277_v12  ;;  %2257 = vmatprep.subr.bf16.mxu0 %v3233_v43  ;;  %v2117_v15 = vpack.c.bf16 %v2577_v32, %v2575_v31  ;;  %v2120_v8 = vpack.c.bf16 %v2588_v39, %v2586_v38  ;;  %v2264_v31 = vpack.c.bf16 %v2596_v48, %v2591_v41 }
  0x78   :  { %2115 = vmatpush3.bf16.msra.mxu1 %v2114_v57  ;;  %v3280_v32 = vmov 0.0   ;;  %v2123_v36 = vpack.c.bf16 %v2604_v54, %v2602_v53  ;;  %v2267_v37 = vpack.c.bf16 %v2608_v56, %v2606_v55  ;;  %v2126_v38 = vpack.c.bf16 %v2615_v6, %v2613_v5  ;;  %v3281_v56 = vld [vmem:[#allocation27_spill] sm:$0xff] }
  0x79   :  { %2116 = vmatprep.subr.bf16.mxu1 %v3233_v43  ;;  %v2270_v39 = vpack.c.bf16 %v2623_v9, %v2617_v7  ;;  %v2129_v41 = vpack.c.bf16 %v2630_v23, %v2628_v20  ;;  %v2273_v48 = vpack.c.bf16 %v2637_v26, %v2635_v25  ;;  %v2132_v53 = vpack.c.bf16 %v2645_v35, %v2643_v34  ;;  %v3282_v9 = vld [vmem:[#allocation28_spill] sm:$0xff]  ;;  %v3283_v20 = vld [vmem:[#allocation13_spill] sm:$0xff]  ;;  %v3284_v23 = vld [vmem:[#allocation30_spill] sm:$0xff] }
  0x7a   :  { %2259 = vmatpush3.bf16.msra.mxu0 %v2258_v4  ;;  %v2276_v54 = vpack.c.bf16 %v2652_v45, %v2650_v44  ;;  %v2135_v55 = vpack.c.bf16 %v2666_v58, %v2656_v50  ;;  %v2279_v5 = vpack.c.bf16 %v3281_v56, %v2670_v61  ;;  %v2138_v6 = vpack.c.bf16 %v2712_v1, %v2710_v3  ;;  %v3285_v1 = vld [vmem:[#allocation14_spill] sm:$0xff]  ;;  %v3286_v25 = vld [vmem:[#allocation15_spill] sm:$0xff]  ;;  %v3287_v26 = vld [vmem:[#allocation16_spill] sm:$0xff] }
  0x7b   :  { %2260 = vmatprep.subr.bf16.mxu0 %v3233_v43  ;;  %1716 = vmatmul.mubr.f32.vlgmr.msra.gmra.mrb[2].mxu1 %v2658_v51  ;;  %v2282_v7 = vpack.c.bf16 %v2817_v29, %v2793_v60  ;;  %v3288_v34 = vld [vmem:[#allocation17_spill] sm:$0xff]  ;;  %v3289_v35 = vld [vmem:[#allocation18_spill] sm:$0xff]  ;;  %v3290_v44 = vld [vmem:[#allocation19_spill] sm:$0xff]  ;;  %v3300_v18 = vand.u32 4294901760, %v3282_v9  ;;  %v3301_v19 = vand.u32 4294901760, %v3284_v23 }
  0x7c   :  { %2118 = vmatpush3.bf16.msra.mxu1 %v2117_v15  ;;  %1750 = vmatprep.mubr.msk.f32.mxu1 %vm2475_vm0, %v3280_v32  ;;  %v3291_v45 = vld [vmem:[#allocation20_spill] sm:$0xff]  ;;  %v3292_v50 = vld [vmem:[#allocation21_spill] sm:$0xff]  ;;  %v3293_v58 = vld [vmem:[#allocation22_spill] sm:$0xff] }
  0x7d   :  { %1926 = vmatmul.mubr.f32.vlgmr.msra.gmra.mrb[0].mxu0 %v2701_v52  ;;  %2119 = vmatprep.subr.bf16.mxu1 %v3233_v43  ;;  %v3294_v61 = vld [vmem:[#allocation23_spill] sm:$0xff]  ;;  %v3295_v3 = vld [vmem:[#allocation24_spill] sm:$0xff]  ;;  %v3296_v60 = vld [vmem:[#allocation25_spill] sm:$0xff] }
  0x7e   :  { %2262 = vmatpush3.bf16.msra.mxu0 %v2261_v24  ;;  %1960 = vmatprep.mubr.msk.f32.mxu0 %vm2475_vm0, %v3280_v32  ;;  %v3297_v29 = vld [vmem:[#allocation26_spill] sm:$0xff]  ;;  %v3302_v28 = vld [vmem:[#allocation32_spill] sm:$0xff]  ;;  %v3303_v46 = vld [vmem:[#allocation33_spill] sm:$0xff] }
  0x7f   :  { %2263 = vmatprep.subr.bf16.mxu0 %v3233_v43  ;;  %v3304_v42 = vld [vmem:[#allocation34_spill] sm:$0xff] }
  0x80   :  { %2121 = vmatpush3.bf16.msra.mxu1 %v2120_v8 }
  0x81   :  { %2122 = vmatprep.subr.bf16.mxu1 %v3233_v43 }
  0x82   :  { %2265 = vmatpush3.bf16.msra.mxu0 %v2264_v31 }
  0x83   :  { %2266 = vmatprep.subr.bf16.mxu0 %v3233_v43 }
  0x84   :  { %2124 = vmatpush3.bf16.msra.mxu1 %v2123_v36 }
  0x85   :  { %2125 = vmatprep.subr.bf16.mxu1 %v3233_v43 }
  0x86   :  { %2268 = vmatpush3.bf16.msra.mxu0 %v2267_v37 }
  0x87   :  { %2269 = vmatprep.subr.bf16.mxu0 %v3233_v43 }
  0x88   :  { %2127 = vmatpush3.bf16.msra.mxu1 %v2126_v38 }
  0x89   :  { %2128 = vmatprep.subr.bf16.mxu1 %v3233_v43 }
  0x8a   :  { %2271 = vmatpush3.bf16.msra.mxu0 %v2270_v39 }
  0x8b   :  { %2272 = vmatprep.subr.bf16.mxu0 %v3233_v43 }
  0x8c   :  { %2130 = vmatpush3.bf16.msra.mxu1 %v2129_v41 }
  0x8d   :  { %2131 = vmatprep.subr.bf16.mxu1 %v3233_v43 }
  0x8e   :  { %2274 = vmatpush3.bf16.msra.mxu0 %v2273_v48 }
  0x8f   :  { %2275 = vmatprep.subr.bf16.mxu0 %v3233_v43 }
  0x90   :  { %2133 = vmatpush3.bf16.msra.mxu1 %v2132_v53 }
  0x91   :  { %2134 = vmatprep.subr.bf16.mxu1 %v3233_v43 }
  0x92   :  { %2277 = vmatpush3.bf16.msra.mxu0 %v2276_v54 }
  0x93   :  { %2278 = vmatprep.subr.bf16.mxu0 %v3233_v43 }
  0x94   :  { %2136 = vmatpush3.bf16.msra.mxu1 %v2135_v55 }
  0x95   :  { %2137 = vmatprep.subr.bf16.mxu1 %v3233_v43 }
  0x96   :  { %2280 = vmatpush3.bf16.msra.mxu0 %v2279_v5 }
  0x97   :  { %2281 = vmatprep.subr.bf16.mxu0 %v3233_v43 }
  0x98   :  { %2139 = vmatpush3.bf16.msra.mxu1 %v2138_v6 }
  0x99   :  { %2140 = vmatprep.subr.bf16.mxu1 %v3233_v43 }
  0x9a   :  { %2283 = vmatpush3.bf16.msra.mxu0 %v2282_v7 }
  0x9b   :  { %2284 = vmatprep.subr.bf16.mxu0 %v3233_v43  ;;  %1751 = vmatmul.mubr.f32.vlgmr.msra.gmra.mrb[4].mxu1 %v3282_v9 }
  0x9c   :  { %2142 = vmatpush3.bf16.msra.mxu1 %v3283_v20  ;;  %1785 = vmatprep.mubr.msk.f32.mxu1 %vm2475_vm0, %v3280_v32 }
  0x9d   :  { %1961 = vmatmul.mubr.f32.vlgmr.msra.gmra.mrb[0].mxu0 %v3284_v23  ;;  %2143 = vmatprep.subr.bf16.mxu1 %v3233_v43 }
  0x9e   :  { %2286 = vmatpush3.bf16.msra.mxu0 %v3285_v1  ;;  %1995 = vmatprep.mubr.msk.f32.mxu0 %vm2475_vm0, %v3280_v32 }
  0x9f   :  { %2287 = vmatprep.subr.bf16.mxu0 %v3233_v43 }
  0xa0   :  { %2145 = vmatpush3.bf16.msra.mxu1 %v3286_v25 }
  0xa1   :  { %2146 = vmatprep.subr.bf16.mxu1 %v3233_v43 }
  0xa2   :  { %2289 = vmatpush3.bf16.msra.mxu0 %v3287_v26 }
  0xa3   :  { %2290 = vmatprep.subr.bf16.mxu0 %v3233_v43 }
  0xa4   :  { %2148 = vmatpush3.bf16.msra.mxu1 %v3288_v34 }
  0xa5   :  { %2149 = vmatprep.subr.bf16.mxu1 %v3233_v43 }
  0xa6   :  { %2292 = vmatpush3.bf16.msra.mxu0 %v3289_v35 }
  0xa7   :  { %2293 = vmatprep.subr.bf16.mxu0 %v3233_v43 }
  0xa8   :  { %2151 = vmatpush3.bf16.msra.mxu1 %v3290_v44 }
  0xa9   :  { %2152 = vmatprep.subr.bf16.mxu1 %v3233_v43 }
  0xaa   :  { %2295 = vmatpush3.bf16.msra.mxu0 %v3291_v45 }
  0xab   :  { %2296 = vmatprep.subr.bf16.mxu0 %v3233_v43 }
  0xac   :  { %2154 = vmatpush3.bf16.msra.mxu1 %v3292_v50 }
  0xad   :  { %2155 = vmatprep.subr.bf16.mxu1 %v3233_v43 }
  0xae   :  { %2298 = vmatpush3.bf16.msra.mxu0 %v3293_v58 }
  0xaf   :  { %2299 = vmatprep.subr.bf16.mxu0 %v3233_v43 }
  0xb0   :  { %2157 = vmatpush3.bf16.msra.mxu1 %v3294_v61 }
  0xb1   :  { %2158 = vmatprep.subr.bf16.mxu1 %v3233_v43 }
  0xb2   :  { %2301 = vmatpush3.bf16.msra.mxu0 %v3295_v3 }
  0xb3   :  { %2302 = vmatprep.subr.bf16.mxu0 %v3233_v43 }
  0xb4   :  { %2160 = vmatpush3.bf16.msra.mxu1 %v3296_v60 }
  0xb5   :  { %2161 = vmatprep.subr.bf16.mxu1 %v3233_v43 }
  0xb6   :  { %2304 = vmatpush3.bf16.msra.mxu0 %v3297_v29 }
  0xb7   :  { %2305 = vmatprep.subr.bf16.mxu0 %v3233_v43 }
  0xb8   :  { %2163 = vmatpush3.bf16.msra.mxu1 %v3298_v33 }
  0xb9   :  { %2164 = vmatprep.subr.bf16.mxu1 %v3233_v43 }
  0xba   :  { %2307 = vmatpush3.bf16.msra.mxu0 %v3299_v47 }
  0xbb   :  { %2308 = vmatprep.subr.bf16.mxu0 %v3233_v43  ;;  %1786 = vmatmul.mubr.f32.vlgmr.msra.gmra.mrb[6].mxu1 %v3300_v18 }
  0xbc   :  { %2166 = vmatpush3.bf16.msra.mxu1 %v2867_v10  ;;  %1820 = vmatprep.mubr.msk.f32.mxu1 %vm2475_vm0, %v3280_v32 }
  0xbd   :  { %1996 = vmatmul.mubr.f32.vlgmr.msra.gmra.mrb[0].mxu0 %v3301_v19  ;;  %2167 = vmatprep.subr.bf16.mxu1 %v3233_v43 }
  0xbe   :  { %2310 = vmatpush3.bf16.msra.mxu0 %v2873_v21  ;;  %2030 = vmatprep.mubr.msk.f32.mxu0 %vm2475_vm0, %v3280_v32 }
  0xbf   :  { %2311 = vmatprep.subr.bf16.mxu0 %v3233_v43 }
  0xc0   :  { %2169 = vmatpush3.bf16.msra.mxu1 %v2879_v63 }
  0xc1   :  { %2170 = vmatprep.subr.bf16.mxu1 %v3233_v43 }
  0xc2   :  { %2313 = vmatpush3.bf16.msra.mxu0 %v2885_v62 }
  0xc3   :  { %2314 = vmatprep.subr.bf16.mxu0 %v3233_v43 }
  0xc4   :  { %2172 = vmatpush3.bf16.msra.mxu1 %v2891_v49 }
  0xc5   :  { %2173 = vmatprep.subr.bf16.mxu1 %v3233_v43 }
  0xc6   :  { %2316 = vmatpush3.bf16.msra.mxu0 %v2897_v16 }
  0xc7   :  { %2317 = vmatprep.subr.bf16.mxu0 %v3233_v43 }
  0xc8   :  { %2175 = vmatpush3.bf16.msra.mxu1 %v2904_v27 }
  0xc9   :  { %2176 = vmatprep.subr.bf16.mxu1 %v3233_v43 }
  0xca   :  { %2319 = vmatpush3.bf16.msra.mxu0 %v3302_v28 }
  0xcb   :  { %2320 = vmatprep.subr.bf16.mxu0 %v3233_v43 }
  0xcc   :  { %2178 = vmatpush3.bf16.msra.mxu1 %v3303_v46 }
  0xcd   :  { %2179 = vmatprep.subr.bf16.mxu1 %v3233_v43 }
  0xce   :  { %2322 = vmatpush3.bf16.msra.mxu0 %v3304_v42 }
  0xcf   :  { %2323 = vmatprep.subr.bf16.mxu0 %v3233_v43 }
  0xd0   :  { %2181 = vmatpush3.bf16.msra.mxu1 %v2929_v22 }
  0xd1   :  { %2182 = vmatprep.subr.bf16.mxu1 %v3233_v43 }
  0xd2   :  { %2325 = vmatpush3.bf16.msra.mxu0 %v2935_v13  ;;  %v1412_v13 = vlaneseq }
  0xd3   :  { %2326 = vmatprep.subr.bf16.mxu0 %v3233_v43 }
  0xd4   :  { %2184 = vmatpush3.bf16.msra.mxu1 %v2941_v14  ;;  %v1413_v12 = vshrl.u32 %v1412_v13, 7 }
  0xd5   :  { %2185 = vmatprep.subr.bf16.mxu1 %v3233_v43 }
  0xd6   :  { %2328 = vmatpush3.bf16.msra.mxu0 %v2945_v30  ;;  %v1405_v30 = vld [vmem:[%s3151_s5] sm:$0x1] }
  0xd7   :  { %2329 = vmatprep.subr.bf16.mxu0 %v3233_v43 }
  0xd8   :  { %2187 = vmatpush3.bf16.msra.mxu1 %v2947_v0 }
  0xd9   :  { %2188 = vmatprep.subr.bf16.mxu1 %v3233_v43 }
  0xda   :  { %2331 = vmatpush3.bf16.msra.mxu0 %v2949_v40  ;;  %v1414_v40 = vsub.s32 0, %v1413_v12 }
  0xdb   :  { %2332 = vmatprep.subr.bf16.mxu0 %v3233_v43  ;;  %1821 = vmatmul.mubr.f32.vlgmr.msra.gmra.mrb[8].mxu1 %v2658_v51 }
  0xdc   :  { %2190 = vmatpush3.bf16.msra.mxu1 %v3283_v20  ;;  %1855 = vmatprep.mubr.msk.f32.mxu1 %vm2475_vm0, %v3280_v32 }
  0xdd   :  { %2031 = vmatmul.mubr.f32.vlgmr.msra.gmra.mrb[0].mxu0 %v2701_v52  ;;  %2191 = vmatprep.subr.bf16.mxu1 %v3233_v43 }
  0xde   :  { %2334 = vmatpush3.bf16.msra.mxu0 %v3285_v1  ;;  %2065 = vmatprep.mubr.msk.f32.mxu0 %vm2475_vm0, %v3280_v32 }
  0xdf   :  { %2335 = vmatprep.subr.bf16.mxu0 %v3233_v43 }
  0xe0   :  { %2193 = vmatpush3.bf16.msra.mxu1 %v3286_v25 }
  0xe1   :  { %2194 = vmatprep.subr.bf16.mxu1 %v3233_v43 }
  0xe2   :  { %2337 = vmatpush3.bf16.msra.mxu0 %v3287_v26 }
  0xe3   :  { %2338 = vmatprep.subr.bf16.mxu0 %v3233_v43 }
  0xe4   :  { %2196 = vmatpush3.bf16.msra.mxu1 %v3288_v34 }
  0xe5   :  { %2197 = vmatprep.subr.bf16.mxu1 %v3233_v43 }
  0xe6   :  { %2340 = vmatpush3.bf16.msra.mxu0 %v3289_v35 }
  0xe7   :  { %2341 = vmatprep.subr.bf16.mxu0 %v3233_v43 }
  0xe8   :  { %2199 = vmatpush3.bf16.msra.mxu1 %v3290_v44 }
  0xe9   :  { %2200 = vmatprep.subr.bf16.mxu1 %v3233_v43 }
  0xea   :  { %2343 = vmatpush3.bf16.msra.mxu0 %v3291_v45 }
  0xeb   :  { %2344 = vmatprep.subr.bf16.mxu0 %v3233_v43 }
  0xec   :  { %2202 = vmatpush3.bf16.msra.mxu1 %v3292_v50 }
  0xed   :  { %2203 = vmatprep.subr.bf16.mxu1 %v3233_v43 }
  0xee   :  { %2346 = vmatpush3.bf16.msra.mxu0 %v3293_v58 }
  0xef   :  { %2347 = vmatprep.subr.bf16.mxu0 %v3233_v43 }
  0xf0   :  { %2205 = vmatpush3.bf16.msra.mxu1 %v3294_v61 }
  0xf1   :  { %2206 = vmatprep.subr.bf16.mxu1 %v3233_v43 }
  0xf2   :  { %2349 = vmatpush3.bf16.msra.mxu0 %v3295_v3 }
  0xf3   :  { %2350 = vmatprep.subr.bf16.mxu0 %v3233_v43 }
  0xf4   :  { %2208 = vmatpush3.bf16.msra.mxu1 %v3296_v60 }
  0xf5   :  { %2209 = vmatprep.subr.bf16.mxu1 %v3233_v43 }
  0xf6   :  { %2352 = vmatpush3.bf16.msra.mxu0 %v3297_v29 }
  0xf7   :  { %2353 = vmatprep.subr.bf16.mxu0 %v3233_v43 }
  0xf8   :  { %2211 = vmatpush3.bf16.msra.mxu1 %v3298_v33 }
  0xfa   :  { %2355 = vmatpush3.bf16.msra.mxu0 %v3299_v47 }
  0xfb   :  { %1856 = vmatmul.mubr.f32.vlgmr.msra.gmra.mrb[10].mxu1 %v2658_v51  ;;  %v1404_v51 = vld [vmem:[%s3150_s4] sm:$0x1]  ;;  %s2477_s4 = smov [#allocation9]  }
  0xfc   :  { %v1415_v4 = vrot.slane %v1404_v51, %v1414_v40  ;;  %s1433_s20 = sshll.u32 %s2477_s4, 4  ;;  %s1434_s20 = int_to_ptr.vmem [resolvable:$true] %s1433_s20 }
  0xfd   :  { %2066 = vmatmul.mubr.f32.vlgmr.msra.gmra.mrb[0].mxu0 %v2701_v52  ;;  %v1406_v52 = vld [vmem:[%s3152_s6] sm:$0x1]  ;;  %s2441_s6 = scalar_lea.vmem %s1434_s20, 128  ;;  %p2446_p11 = scmp.lt.s32.totalorder %s1434_s20, %s1434_s20 }
  0xfe   :  { %v1407_v11 = vmul.f32 %v1406_v52, %v1404_v51  ;;  %p2442_p10 = scmp.ne.s32.totalorder %s1434_s20, %s2441_s6  ;;  %p2447_p12 = scmp.lt.s32.totalorder %s2441_s6, %s2441_s6 }
 0x100   :  { %v1408_v57 = vadd.f32 %v1407_v11, %v1405_v30  ;;  %p2448_p13 = por %p2447_p12, %p2446_p11 }
 0x102   :  { %v1422_v24 = vrot.slane %v1408_v57, %v1414_v40  ;;  %p2449_p0 = pnand %p2448_p13, %p2442_p10 }
 0x12e   :  { %v178_v59 = vpop.f32.mrb[0].mxu1 }
 0x12f   :  { %v1682_v10 = vpop.f32.mrb[1].mxu1 }
 0x14e   :  { %v329_v21 = vpop.f32.mrb[2].mxu1 }
 0x14f   :  { %v330_v63 = vadd.f32 %v329_v21, %v178_v59  ;;  %v1717_v62 = vpop.f32.mrb[3].mxu1 }
 0x16e   :  { %v433_v49 = vpop.f32.mrb[4].mxu1 }
 0x16f   :  { %v434_v16 = vadd.f32 %v433_v49, %v330_v63  ;;  %v1752_v2 = vpop.f32.mrb[5].mxu1 }
 0x18e   :  { %v522_v27 = vpop.f32.mrb[6].mxu1 }
 0x18f   :  { %v523_v14 = vadd.f32 %v522_v27, %v434_v16  ;;  %v1787_v0 = vpop.f32.mrb[7].mxu1 }
 0x1ae   :  { %v641_v43 = vpop.f32.mrb[8].mxu1 }
 0x1af   :  { %v642_v22 = vadd.f32 %v641_v43, %v523_v14  ;;  %v1822_v17 = vpop.f32.mrb[9].mxu1 }
 0x1ce   :  { %v728_v15 = vpop.f32.mrb[10].mxu1 }
 0x1cf   :  { %v729_v8 = vadd.f32 %v728_v15, %v642_v22  ;;  %v1857_v32 = vpop.f32.mrb[11].mxu1 }
 0x1d0   :  { %v1395_v31 = vpop.f32.mrb[0].mxu0 }
 0x1d1   :  { %v1417_v36 = vmul.f32 %v1415_v4, %v1395_v31  ;;  %v2067_v37 = vpop.f32.mrb[1].mxu0 }
 0x1d3   :  { %v1424_v38 = vadd.f32 %v1422_v24, %v1417_v36 }
 0x1d5   :  { %v1425_v39 = vadd.f32 %v1424_v38, %v729_v8 }
 0x1d7   :  { %1426 = vst [vmem:[#allocation9] sm:$0xff] %v1425_v39 }
 0x1d8   :  { %2452 = shalt.err (!%p2449_p0)
}
 0x1d9   :  { %s2453_s22 = scalar_lea.hbm %s3153_s7, 128 }
 0x1da   :  { %p2454_p1 = scmp.ne.s32.totalorder %s3153_s7, %s2453_s22  ;;  %p2457_p2 = scmp.lt.u32.totalorder %s2453_s22, %s3153_s7 }
 0x1dc   :  { %p2459_p3 = pnand %p2457_p2, %p2454_p1 }
 0x1de   :  { %2462 = shalt.err (!%p2459_p3)
}
 0x1df   :  { %1436 = dma.vmem_to_hbm [thread:$0]  %s1434_s20, 128, %s3153_s7, [#allocation5]  }
 0x1e0   :  { %2467 = dma.done.wait [#allocation5], 128  }
 0x1e1   :  { %2468 = vsyncadd [#allocation5], 4294967168 }
 0x1e2   :  { %1440 = vsyncpa [#allocation4], 1 }
 0x1e3   :  { %1441 = vsyncpa [#allocation7], 1 }
 0x1e4   :  { %1442 = vsyncpa [#allocation5], 1 }

</bundles_post_ra>
